<compile_context>
chip_gen: v7x
topology: tpu7x:2x2x1
jax: 0.10.0
libtpu: 0.0.40
codegen_flags: <defaults>
</compile_context>

<pallas_src>
import functools
import math

import jax
import jax.numpy as jnp
from jax.experimental import pallas as pl
from jax.experimental.pallas import tpu as pltpu


def _bert_attention_kernel(x_ref, mask_ref,
                           wqkv_ref, bqkv_ref,
                           wo_ref, bo_ref, gamma_ref, beta_ref,
                           out_ref, ctx_scratch,
                           *, num_heads, head_dim, hidden):
    # x_ref   : (1, S, H) f32         mask_ref: (1, S, S) f32 (1.0 == masked)
    # wqkv_ref: (3H, H) bf16 (torch (out, in) layout, [Wq; Wk; Wv])
    # bqkv_ref: (1, 3H) f32 ([bq, 0, bv] — key bias omitted, matches module)
    # wo_ref  : (H, H) bf16           bo/gamma/beta: (1, H) f32
    # ctx_scratch: (S, H) bf16 VMEM scratch (per-head context concat target)
    H = hidden
    x = x_ref[0]                                  # (S, H) f32 (residual + LN)
    x_bf = x.astype(jnp.bfloat16)

    # Fused QKV projection: one (S,H)@(H,3H) MXU pass, bf16-in / f32-acc.
    qkv = jax.lax.dot_general(x_bf, wqkv_ref[...],
                              (((1,), (1,)), ((), ())),
                              preferred_element_type=jnp.float32)   # (S, 3H)
    qkv = qkv + bqkv_ref[...]

    q_bf = qkv[:, :H].astype(jnp.bfloat16)
    k_bf = qkv[:, H:2 * H].astype(jnp.bfloat16)
    v_bf = qkv[:, 2 * H:].astype(jnp.bfloat16)

    scale = jnp.float32(1.0 / math.sqrt(head_dim))
    # Additive mask bias, built once (masked_fill(-inf) == add -inf in f32).
    mask_bias = jnp.where(mask_ref[0] > 0, jnp.float32(-jnp.inf),
                          jnp.float32(0.0))                          # (S, S)

    # TODO(synk): replace this static unroll with a heads-leading batched
    # einsum or fori_loop for production head counts / head_dim=64.
    for h in range(num_heads):
        sl = slice(h * head_dim, (h + 1) * head_dim)
        # scores = (q_h @ k_h.T) * scale, f32 accumulation.
        s = jax.lax.dot_general(q_bf[:, sl], k_bf[:, sl],
                                (((1,), (1,)), ((), ())),
                                preferred_element_type=jnp.float32)  # (S, S)
        s = s * scale + mask_bias

        # Numerically-stable softmax, statistics kept in f32.
        m = jnp.max(s, axis=-1, keepdims=True)
        e = jnp.exp(s - m)
        denom = jnp.sum(e, axis=-1, keepdims=True)
        # approx=False keeps the tight tolerance vs. the f32 reference;
        # flip to approx=True (EUP slot) once tolerance allows.
        p = e * pl.reciprocal(denom, approx=False)

        ctx_h = jnp.dot(p.astype(jnp.bfloat16), v_bf[:, sl],
                        preferred_element_type=jnp.float32)          # (S, Dh)
        # Concat heads by writing into the VMEM scratch (no lane-axis concat,
        # no per-head K=Dh output matmuls).
        ctx_scratch[:, sl] = ctx_h.astype(jnp.bfloat16)

    # Single K=H output projection (full MXU depth), bf16-in / f32-acc.
    attn = jax.lax.dot_general(ctx_scratch[...], wo_ref[...],
                               (((1,), (1,)), ((), ())),
                               preferred_element_type=jnp.float32)   # (S, H)
    attn = attn + bo_ref[...]

    # Residual + LayerNorm (eps = 1e-5, biased variance), all in f32.
    resid = attn + x
    mu = jnp.mean(resid, axis=-1, keepdims=True)
    var = jnp.mean((resid - mu) ** 2, axis=-1, keepdims=True)
    normed = (resid - mu) * jax.lax.rsqrt(var + jnp.float32(1e-5))
    out_ref[0] = normed * gamma_ref[...] + beta_ref[...]


def bert_attention(x, mask, wq, bq, wk, wv, bv, wo, bo, gamma, beta, *, num_heads):
    """x: (B, S, H); mask: (B, S, S) with 1.0 == masked-out key.
    Weights in torch (out, in) layout; biases/gamma/beta: (H,). Returns (B, S, H) f32."""
    B, S, H = x.shape
    assert H % num_heads == 0
    head_dim = H // num_heads

    x = x.astype(jnp.float32)
    mask = mask.astype(jnp.float32)

    # Host-side fusion of the QKV projection (bf16 weights, zero key bias).
    wqkv = jnp.concatenate([wq, wk, wv], axis=0).astype(jnp.bfloat16)      # (3H, H)
    bqkv = jnp.concatenate(
        [bq.astype(jnp.float32), jnp.zeros((H,), jnp.float32),
         bv.astype(jnp.float32)]).reshape(1, 3 * H)                        # (1, 3H)
    row = lambda t: t.reshape(1, H).astype(jnp.float32)

    kernel = functools.partial(_bert_attention_kernel,
                               num_heads=num_heads, head_dim=head_dim, hidden=H)

    batch_map = lambda b: (b, 0, 0)
    resident = lambda b: (0, 0)     # weights stay resident across the grid

    return pl.pallas_call(
        kernel,
        out_shape=jax.ShapeDtypeStruct((B, S, H), jnp.float32),
        grid=(B,),
        in_specs=[
            pl.BlockSpec((1, S, H), batch_map),     # x (f32)
            pl.BlockSpec((1, S, S), batch_map),     # mask (f32)
            pl.BlockSpec((3 * H, H), resident),     # Wqkv (bf16)
            pl.BlockSpec((1, 3 * H), resident),     # bqkv (f32)
            pl.BlockSpec((H, H), resident),         # Wo (bf16)
            pl.BlockSpec((1, H), resident),         # bo
            pl.BlockSpec((1, H), resident),         # gamma
            pl.BlockSpec((1, H), resident),         # beta
        ],
        out_specs=pl.BlockSpec((1, S, H), batch_map),
        scratch_shapes=[pltpu.VMEM((S, H), jnp.bfloat16)],   # per-head ctx concat
        compiler_params=pltpu.CompilerParams(
            dimension_semantics=("parallel",)),
    )(x, mask, wqkv, bqkv,
      wo.astype(jnp.bfloat16), row(bo), row(gamma), row(beta))


def reference(x, mask, wq, bq, wk, wv, bv, wo, bo, gamma, beta, num_heads):
    """Pure f32 reference matching the PyTorch module semantics."""
    B, S, H = x.shape
    Dh = H // num_heads
    q = x @ wq.T + bq
    k = x @ wk.T                      # key bias not applied (matches module)
    v = x @ wv.T + bv

    def split(t):
        return t.reshape(B, S, num_heads, Dh).transpose(0, 2, 1, 3)

    qh, kh, vh = split(q), split(k), split(v)
    qh = qh / math.sqrt(Dh)
    scores = jnp.einsum('bhqd,bhkd->bhqk', qh, kh)
    scores = jnp.where(mask[:, None, :, :] > 0, -jnp.inf, scores)
    probs = jax.nn.softmax(scores, axis=-1)
    ctx = jnp.einsum('bhqk,bhkd->bhqd', probs, vh)
    ctx = ctx.transpose(0, 2, 1, 3).reshape(B, S, H)
    attn = ctx @ wo.T + bo
    resid = attn + x
    mu = resid.mean(-1, keepdims=True)
    var = ((resid - mu) ** 2).mean(-1, keepdims=True)
    return gamma * (resid - mu) / jnp.sqrt(var + 1e-5) + beta


if __name__ == "__main__":
    B, S, H = 2, 8, 32
    num_heads = 4

    key = jax.random.PRNGKey(0)
    kx, kq, kbq, kk, kv, kbv, ko, kbo = jax.random.split(key, 8)

    x = jax.random.normal(kx, (B, S, H), jnp.float32)

    bound = 1.0 / math.sqrt(H)
    u = lambda k, shape: jax.random.uniform(k, shape, jnp.float32,
                                            minval=-bound, maxval=bound)
    wq, wk, wv, wo = u(kq, (H, H)), u(kk, (H, H)), u(kv, (H, H)), u(ko, (H, H))
    bq, bv, bo = u(kbq, (H,)), u(kbv, (H,)), u(kbo, (H,))
    gamma = jnp.ones((H,), jnp.float32)
    beta = jnp.zeros((H,), jnp.float32)

    # attention_mask: 1.0 == masked out. Batch 1 masks its last 2 keys.
    mask = jnp.zeros((B, S, S), jnp.float32)
    mask = mask.at[1, :, S - 2:].set(1.0)

    out = bert_attention(x, mask, wq, bq, wk, wv, bv, wo, bo, gamma, beta,
                         num_heads=num_heads)
    out = jax.block_until_ready(out)

    ref = reference(x, mask, wq, bq, wk, wv, bv, wo, bo, gamma, beta, num_heads)
    assert out.shape == (B, S, H)
    # Kernel uses bf16 matmul operands (f32 accumulation) per the perf review,
    # so compare against the pure-f32 reference at a bf16-appropriate tolerance.
    assert jnp.allclose(out, ref, atol=2e-2, rtol=2e-2), "mismatch vs reference"
    assert bool(jnp.isfinite(out).all()), "non-finite output"

    print("KERNEL_OK")
</pallas_src>

<mosaic_0001>
module attributes {stable_mosaic.version = 11 : i64} {
  func.func @_bert_attention_kernel(%arg0: i32, %arg1: memref<1x8x32xf32, #tpu.memory_space<vmem>>, %arg2: memref<1x8x8xf32, #tpu.memory_space<vmem>>, %arg3: memref<96x32xbf16, #tpu.memory_space<vmem>>, %arg4: memref<1x96xf32, #tpu.memory_space<vmem>>, %arg5: memref<32x32xbf16, #tpu.memory_space<vmem>>, %arg6: memref<1x32xf32, #tpu.memory_space<vmem>>, %arg7: memref<1x32xf32, #tpu.memory_space<vmem>>, %arg8: memref<1x32xf32, #tpu.memory_space<vmem>>, %arg9: memref<1x8x32xf32, #tpu.memory_space<vmem>>, %arg10: memref<8x32xbf16, #tpu.memory_space<vmem>>) attributes {dimension_semantics = [#tpu.dimension_semantics<parallel>], iteration_bounds = array<i64: 2>, scalar_prefetch = 0 : i64, scratch_operands = 1 : i64, tpu.core_type = #tpu.core_type<tc>, window_params = [{transform_indices = @transform_0, window_bounds = array<i64: 1, 8, 32>}, {transform_indices = @transform_1, window_bounds = array<i64: 1, 8, 8>}, {pipeline_mode = #tpu.pipeline_mode<synchronous>, transform_indices = @transform_2, window_bounds = array<i64: 96, 32>}, {pipeline_mode = #tpu.pipeline_mode<synchronous>, transform_indices = @transform_3, window_bounds = array<i64: 1, 96>}, {pipeline_mode = #tpu.pipeline_mode<synchronous>, transform_indices = @transform_4, window_bounds = array<i64: 32, 32>}, {pipeline_mode = #tpu.pipeline_mode<synchronous>, transform_indices = @transform_5, window_bounds = array<i64: 1, 32>}, {pipeline_mode = #tpu.pipeline_mode<synchronous>, transform_indices = @transform_6, window_bounds = array<i64: 1, 32>}, {pipeline_mode = #tpu.pipeline_mode<synchronous>, transform_indices = @transform_7, window_bounds = array<i64: 1, 32>}, {transform_indices = @transform_8, window_bounds = array<i64: 1, 8, 32>}]} {
    %c0 = arith.constant 0 : index
    %c0_0 = arith.constant 0 : index
    %c0_1 = arith.constant 0 : index
    %0 = vector.load %arg1[%c0, %c0_0, %c0_1] : memref<1x8x32xf32, #tpu.memory_space<vmem>>, vector<1x8x32xf32>
    %1 = vector.shape_cast %0 : vector<1x8x32xf32> to vector<8x32xf32>
    %2 = arith.truncf %1 : vector<8x32xf32> to vector<8x32xbf16>
    %c0_2 = arith.constant 0 : index
    %c0_3 = arith.constant 0 : index
    %3 = vector.load %arg3[%c0_2, %c0_3] : memref<96x32xbf16, #tpu.memory_space<vmem>>, vector<96x32xbf16>
    %cst = arith.constant dense<0.000000e+00> : vector<8x96xf32>
    %4 = tpu.matmul %2, %3, %cst {dimension_numbers = #tpu.dot_dimension_numbers<[1], [1], [0], [0], [0, 0, 1, 0], [], []>} : vector<8x32xbf16>, vector<96x32xbf16>, vector<8x96xf32> -> vector<8x96xf32>
    %c0_4 = arith.constant 0 : index
    %c0_5 = arith.constant 0 : index
    %5 = vector.load %arg4[%c0_4, %c0_5] : memref<1x96xf32, #tpu.memory_space<vmem>>, vector<1x96xf32>
    %6 = vector.broadcast %5 : vector<1x96xf32> to vector<8x96xf32>
    %7 = arith.addf %4, %6 : vector<8x96xf32>
    %8 = vector.extract_strided_slice %7 {offsets = [0, 0], sizes = [8, 32], strides = [1, 1]} : vector<8x96xf32> to vector<8x32xf32>
    %9 = arith.truncf %8 : vector<8x32xf32> to vector<8x32xbf16>
    %10 = vector.extract_strided_slice %7 {offsets = [0, 32], sizes = [8, 32], strides = [1, 1]} : vector<8x96xf32> to vector<8x32xf32>
    %11 = arith.truncf %10 : vector<8x32xf32> to vector<8x32xbf16>
    %12 = vector.extract_strided_slice %7 {offsets = [0, 64], sizes = [8, 32], strides = [1, 1]} : vector<8x96xf32> to vector<8x32xf32>
    %13 = arith.truncf %12 : vector<8x32xf32> to vector<8x32xbf16>
    %c0_6 = arith.constant 0 : index
    %c0_7 = arith.constant 0 : index
    %c0_8 = arith.constant 0 : index
    %14 = vector.load %arg2[%c0_6, %c0_7, %c0_8] : memref<1x8x8xf32, #tpu.memory_space<vmem>>, vector<1x8x8xf32>
    %15 = vector.shape_cast %14 : vector<1x8x8xf32> to vector<8x8xf32>
    %cst_9 = arith.constant 0.000000e+00 : f32
    %16 = vector.broadcast %cst_9 : f32 to vector<8x8xf32>
    %17 = arith.cmpf ogt, %15, %16 : vector<8x8xf32>
    %cst_10 = arith.constant 0xFF800000 : f32
    %cst_11 = arith.constant 0.000000e+00 : f32
    %18 = vector.broadcast %cst_10 : f32 to vector<8x8xf32>
    %19 = vector.broadcast %cst_11 : f32 to vector<8x8xf32>
    %20 = arith.select %17, %18, %19 : vector<8x8xi1>, vector<8x8xf32>
    %21 = vector.extract_strided_slice %9 {offsets = [0, 0], sizes = [8, 8], strides = [1, 1]} : vector<8x32xbf16> to vector<8x8xbf16>
    %22 = vector.extract_strided_slice %11 {offsets = [0, 0], sizes = [8, 8], strides = [1, 1]} : vector<8x32xbf16> to vector<8x8xbf16>
    %cst_12 = arith.constant dense<0.000000e+00> : vector<8x8xf32>
    %23 = tpu.matmul %21, %22, %cst_12 {dimension_numbers = #tpu.dot_dimension_numbers<[1], [1], [0], [0], [0, 0, 1, 0], [], []>} : vector<8x8xbf16>, vector<8x8xbf16>, vector<8x8xf32> -> vector<8x8xf32>
    %cst_13 = arith.constant 0.353553385 : f32
    %24 = vector.broadcast %cst_13 : f32 to vector<8x8xf32>
    %25 = arith.mulf %23, %24 : vector<8x8xf32>
    %26 = arith.addf %25, %20 : vector<8x8xf32>
    %cst_14 = arith.constant dense<0xFF800000> : vector<8xf32>
    %27 = vector.multi_reduction <maximumf>, %26, %cst_14 [1] : vector<8x8xf32> to vector<8xf32>
    %28 = vector.shape_cast %27 : vector<8xf32> to vector<8x1xf32>
    %29 = vector.broadcast %28 : vector<8x1xf32> to vector<8x8xf32>
    %30 = arith.subf %26, %29 : vector<8x8xf32>
    %31 = math.exp %30 : vector<8x8xf32>
    %cst_15 = arith.constant dense<0.000000e+00> : vector<8xf32>
    %32 = vector.multi_reduction <add>, %31, %cst_15 [1] : vector<8x8xf32> to vector<8xf32>
    %33 = vector.shape_cast %32 : vector<8xf32> to vector<8x1xf32>
    %34 = tpu.reciprocal %33 : vector<8x1xf32> -> vector<8x1xf32>
    %35 = vector.broadcast %34 : vector<8x1xf32> to vector<8x8xf32>
    %36 = arith.mulf %31, %35 : vector<8x8xf32>
    %37 = arith.truncf %36 : vector<8x8xf32> to vector<8x8xbf16>
    %38 = vector.extract_strided_slice %13 {offsets = [0, 0], sizes = [8, 8], strides = [1, 1]} : vector<8x32xbf16> to vector<8x8xbf16>
    %cst_16 = arith.constant dense<0.000000e+00> : vector<8x8xf32>
    %39 = tpu.matmul %37, %38, %cst_16 {dimension_numbers = #tpu.dot_dimension_numbers<[1], [0], [0], [1], [0, 0, 1, 1], [], []>} : vector<8x8xbf16>, vector<8x8xbf16>, vector<8x8xf32> -> vector<8x8xf32>
    %40 = arith.truncf %39 : vector<8x8xf32> to vector<8x8xbf16>
    %c0_17 = arith.constant 0 : index
    %c0_18 = arith.constant 0 : index
    %41 = vector.load %arg10[%c0_17, %c0_18] : memref<8x32xbf16, #tpu.memory_space<vmem>>, vector<8x8xbf16>
    tpu.vector_store %arg10[%c0_17, %c0_18], %40 {strides = array<i32>} : memref<8x32xbf16, #tpu.memory_space<vmem>>, vector<8x8xbf16>,
    %42 = vector.extract_strided_slice %9 {offsets = [0, 8], sizes = [8, 8], strides = [1, 1]} : vector<8x32xbf16> to vector<8x8xbf16>
    %43 = vector.extract_strided_slice %11 {offsets = [0, 8], sizes = [8, 8], strides = [1, 1]} : vector<8x32xbf16> to vector<8x8xbf16>
    %cst_19 = arith.constant dense<0.000000e+00> : vector<8x8xf32>
    %44 = tpu.matmul %42, %43, %cst_19 {dimension_numbers = #tpu.dot_dimension_numbers<[1], [1], [0], [0], [0, 0, 1, 0], [], []>} : vector<8x8xbf16>, vector<8x8xbf16>, vector<8x8xf32> -> vector<8x8xf32>
    %cst_20 = arith.constant 0.353553385 : f32
    %45 = vector.broadcast %cst_20 : f32 to vector<8x8xf32>
    %46 = arith.mulf %44, %45 : vector<8x8xf32>
    %47 = arith.addf %46, %20 : vector<8x8xf32>
    %cst_21 = arith.constant dense<0xFF800000> : vector<8xf32>
    %48 = vector.multi_reduction <maximumf>, %47, %cst_21 [1] : vector<8x8xf32> to vector<8xf32>
    %49 = vector.shape_cast %48 : vector<8xf32> to vector<8x1xf32>
    %50 = vector.broadcast %49 : vector<8x1xf32> to vector<8x8xf32>
    %51 = arith.subf %47, %50 : vector<8x8xf32>
    %52 = math.exp %51 : vector<8x8xf32>
    %cst_22 = arith.constant dense<0.000000e+00> : vector<8xf32>
    %53 = vector.multi_reduction <add>, %52, %cst_22 [1] : vector<8x8xf32> to vector<8xf32>
    %54 = vector.shape_cast %53 : vector<8xf32> to vector<8x1xf32>
    %55 = tpu.reciprocal %54 : vector<8x1xf32> -> vector<8x1xf32>
    %56 = vector.broadcast %55 : vector<8x1xf32> to vector<8x8xf32>
    %57 = arith.mulf %52, %56 : vector<8x8xf32>
    %58 = arith.truncf %57 : vector<8x8xf32> to vector<8x8xbf16>
    %59 = vector.extract_strided_slice %13 {offsets = [0, 8], sizes = [8, 8], strides = [1, 1]} : vector<8x32xbf16> to vector<8x8xbf16>
    %cst_23 = arith.constant dense<0.000000e+00> : vector<8x8xf32>
    %60 = tpu.matmul %58, %59, %cst_23 {dimension_numbers = #tpu.dot_dimension_numbers<[1], [0], [0], [1], [0, 0, 1, 1], [], []>} : vector<8x8xbf16>, vector<8x8xbf16>, vector<8x8xf32> -> vector<8x8xf32>
    %61 = arith.truncf %60 : vector<8x8xf32> to vector<8x8xbf16>
    %c0_24 = arith.constant 0 : index
    %c8 = arith.constant 8 : index
    %62 = vector.load %arg10[%c0_24, %c8] : memref<8x32xbf16, #tpu.memory_space<vmem>>, vector<8x8xbf16>
    tpu.vector_store %arg10[%c0_24, %c8], %61 {strides = array<i32>} : memref<8x32xbf16, #tpu.memory_space<vmem>>, vector<8x8xbf16>,
    %63 = vector.extract_strided_slice %9 {offsets = [0, 16], sizes = [8, 8], strides = [1, 1]} : vector<8x32xbf16> to vector<8x8xbf16>
    %64 = vector.extract_strided_slice %11 {offsets = [0, 16], sizes = [8, 8], strides = [1, 1]} : vector<8x32xbf16> to vector<8x8xbf16>
    %cst_25 = arith.constant dense<0.000000e+00> : vector<8x8xf32>
    %65 = tpu.matmul %63, %64, %cst_25 {dimension_numbers = #tpu.dot_dimension_numbers<[1], [1], [0], [0], [0, 0, 1, 0], [], []>} : vector<8x8xbf16>, vector<8x8xbf16>, vector<8x8xf32> -> vector<8x8xf32>
    %cst_26 = arith.constant 0.353553385 : f32
    %66 = vector.broadcast %cst_26 : f32 to vector<8x8xf32>
    %67 = arith.mulf %65, %66 : vector<8x8xf32>
    %68 = arith.addf %67, %20 : vector<8x8xf32>
    %cst_27 = arith.constant dense<0xFF800000> : vector<8xf32>
    %69 = vector.multi_reduction <maximumf>, %68, %cst_27 [1] : vector<8x8xf32> to vector<8xf32>
    %70 = vector.shape_cast %69 : vector<8xf32> to vector<8x1xf32>
    %71 = vector.broadcast %70 : vector<8x1xf32> to vector<8x8xf32>
    %72 = arith.subf %68, %71 : vector<8x8xf32>
    %73 = math.exp %72 : vector<8x8xf32>
    %cst_28 = arith.constant dense<0.000000e+00> : vector<8xf32>
    %74 = vector.multi_reduction <add>, %73, %cst_28 [1] : vector<8x8xf32> to vector<8xf32>
    %75 = vector.shape_cast %74 : vector<8xf32> to vector<8x1xf32>
    %76 = tpu.reciprocal %75 : vector<8x1xf32> -> vector<8x1xf32>
    %77 = vector.broadcast %76 : vector<8x1xf32> to vector<8x8xf32>
    %78 = arith.mulf %73, %77 : vector<8x8xf32>
    %79 = arith.truncf %78 : vector<8x8xf32> to vector<8x8xbf16>
    %80 = vector.extract_strided_slice %13 {offsets = [0, 16], sizes = [8, 8], strides = [1, 1]} : vector<8x32xbf16> to vector<8x8xbf16>
    %cst_29 = arith.constant dense<0.000000e+00> : vector<8x8xf32>
    %81 = tpu.matmul %79, %80, %cst_29 {dimension_numbers = #tpu.dot_dimension_numbers<[1], [0], [0], [1], [0, 0, 1, 1], [], []>} : vector<8x8xbf16>, vector<8x8xbf16>, vector<8x8xf32> -> vector<8x8xf32>
    %82 = arith.truncf %81 : vector<8x8xf32> to vector<8x8xbf16>
    %c0_30 = arith.constant 0 : index
    %c16 = arith.constant 16 : index
    %83 = vector.load %arg10[%c0_30, %c16] : memref<8x32xbf16, #tpu.memory_space<vmem>>, vector<8x8xbf16>
    tpu.vector_store %arg10[%c0_30, %c16], %82 {strides = array<i32>} : memref<8x32xbf16, #tpu.memory_space<vmem>>, vector<8x8xbf16>,
    %84 = vector.extract_strided_slice %9 {offsets = [0, 24], sizes = [8, 8], strides = [1, 1]} : vector<8x32xbf16> to vector<8x8xbf16>
    %85 = vector.extract_strided_slice %11 {offsets = [0, 24], sizes = [8, 8], strides = [1, 1]} : vector<8x32xbf16> to vector<8x8xbf16>
    %cst_31 = arith.constant dense<0.000000e+00> : vector<8x8xf32>
    %86 = tpu.matmul %84, %85, %cst_31 {dimension_numbers = #tpu.dot_dimension_numbers<[1], [1], [0], [0], [0, 0, 1, 0], [], []>} : vector<8x8xbf16>, vector<8x8xbf16>, vector<8x8xf32> -> vector<8x8xf32>
    %cst_32 = arith.constant 0.353553385 : f32
    %87 = vector.broadcast %cst_32 : f32 to vector<8x8xf32>
    %88 = arith.mulf %86, %87 : vector<8x8xf32>
    %89 = arith.addf %88, %20 : vector<8x8xf32>
    %cst_33 = arith.constant dense<0xFF800000> : vector<8xf32>
    %90 = vector.multi_reduction <maximumf>, %89, %cst_33 [1] : vector<8x8xf32> to vector<8xf32>
    %91 = vector.shape_cast %90 : vector<8xf32> to vector<8x1xf32>
    %92 = vector.broadcast %91 : vector<8x1xf32> to vector<8x8xf32>
    %93 = arith.subf %89, %92 : vector<8x8xf32>
    %94 = math.exp %93 : vector<8x8xf32>
    %cst_34 = arith.constant dense<0.000000e+00> : vector<8xf32>
    %95 = vector.multi_reduction <add>, %94, %cst_34 [1] : vector<8x8xf32> to vector<8xf32>
    %96 = vector.shape_cast %95 : vector<8xf32> to vector<8x1xf32>
    %97 = tpu.reciprocal %96 : vector<8x1xf32> -> vector<8x1xf32>
    %98 = vector.broadcast %97 : vector<8x1xf32> to vector<8x8xf32>
    %99 = arith.mulf %94, %98 : vector<8x8xf32>
    %100 = arith.truncf %99 : vector<8x8xf32> to vector<8x8xbf16>
    %101 = vector.extract_strided_slice %13 {offsets = [0, 24], sizes = [8, 8], strides = [1, 1]} : vector<8x32xbf16> to vector<8x8xbf16>
    %cst_35 = arith.constant dense<0.000000e+00> : vector<8x8xf32>
    %102 = tpu.matmul %100, %101, %cst_35 {dimension_numbers = #tpu.dot_dimension_numbers<[1], [0], [0], [1], [0, 0, 1, 1], [], []>} : vector<8x8xbf16>, vector<8x8xbf16>, vector<8x8xf32> -> vector<8x8xf32>
    %103 = arith.truncf %102 : vector<8x8xf32> to vector<8x8xbf16>
    %c0_36 = arith.constant 0 : index
    %c24 = arith.constant 24 : index
    %104 = vector.load %arg10[%c0_36, %c24] : memref<8x32xbf16, #tpu.memory_space<vmem>>, vector<8x8xbf16>
    tpu.vector_store %arg10[%c0_36, %c24], %103 {strides = array<i32>} : memref<8x32xbf16, #tpu.memory_space<vmem>>, vector<8x8xbf16>,
    %c0_37 = arith.constant 0 : index
    %c0_38 = arith.constant 0 : index
    %105 = vector.load %arg10[%c0_37, %c0_38] : memref<8x32xbf16, #tpu.memory_space<vmem>>, vector<8x32xbf16>
    %c0_39 = arith.constant 0 : index
    %c0_40 = arith.constant 0 : index
    %106 = vector.load %arg5[%c0_39, %c0_40] : memref<32x32xbf16, #tpu.memory_space<vmem>>, vector<32x32xbf16>
    %cst_41 = arith.constant dense<0.000000e+00> : vector<8x32xf32>
    %107 = tpu.matmul %105, %106, %cst_41 {dimension_numbers = #tpu.dot_dimension_numbers<[1], [1], [0], [0], [0, 0, 1, 0], [], []>} : vector<8x32xbf16>, vector<32x32xbf16>, vector<8x32xf32> -> vector<8x32xf32>
    %c0_42 = arith.constant 0 : index
    %c0_43 = arith.constant 0 : index
    %108 = vector.load %arg6[%c0_42, %c0_43] : memref<1x32xf32, #tpu.memory_space<vmem>>, vector<1x32xf32>
    %109 = vector.broadcast %108 : vector<1x32xf32> to vector<8x32xf32>
    %110 = arith.addf %107, %109 : vector<8x32xf32>
    %111 = arith.addf %110, %1 : vector<8x32xf32>
    %cst_44 = arith.constant dense<0.000000e+00> : vector<8xf32>
    %112 = vector.multi_reduction <add>, %111, %cst_44 [1] : vector<8x32xf32> to vector<8xf32>
    %113 = vector.shape_cast %112 : vector<8xf32> to vector<8x1xf32>
    %cst_45 = arith.constant 3.200000e+01 : f32
    %114 = vector.broadcast %cst_45 : f32 to vector<8x1xf32>
    %115 = arith.divf %113, %114 : vector<8x1xf32>
    %116 = vector.broadcast %115 : vector<8x1xf32> to vector<8x32xf32>
    %117 = arith.subf %111, %116 : vector<8x32xf32>
    %118 = arith.mulf %117, %117 : vector<8x32xf32>
    %cst_46 = arith.constant dense<0.000000e+00> : vector<8xf32>
    %119 = vector.multi_reduction <add>, %118, %cst_46 [1] : vector<8x32xf32> to vector<8xf32>
    %120 = vector.shape_cast %119 : vector<8xf32> to vector<8x1xf32>
    %cst_47 = arith.constant 3.200000e+01 : f32
    %121 = vector.broadcast %cst_47 : f32 to vector<8x1xf32>
    %122 = arith.divf %120, %121 : vector<8x1xf32>
    %123 = vector.broadcast %115 : vector<8x1xf32> to vector<8x32xf32>
    %124 = arith.subf %111, %123 : vector<8x32xf32>
    %cst_48 = arith.constant 9.99999974E-6 : f32
    %125 = vector.broadcast %cst_48 : f32 to vector<8x1xf32>
    %126 = arith.addf %122, %125 : vector<8x1xf32>
    %127 = math.rsqrt %126 : vector<8x1xf32>
    %128 = vector.broadcast %127 : vector<8x1xf32> to vector<8x32xf32>
    %129 = arith.mulf %124, %128 : vector<8x32xf32>
    %c0_49 = arith.constant 0 : index
    %c0_50 = arith.constant 0 : index
    %130 = vector.load %arg7[%c0_49, %c0_50] : memref<1x32xf32, #tpu.memory_space<vmem>>, vector<1x32xf32>
    %131 = vector.broadcast %130 : vector<1x32xf32> to vector<8x32xf32>
    %132 = arith.mulf %129, %131 : vector<8x32xf32>
    %c0_51 = arith.constant 0 : index
    %c0_52 = arith.constant 0 : index
    %133 = vector.load %arg8[%c0_51, %c0_52] : memref<1x32xf32, #tpu.memory_space<vmem>>, vector<1x32xf32>
    %134 = vector.broadcast %133 : vector<1x32xf32> to vector<8x32xf32>
    %135 = arith.addf %132, %134 : vector<8x32xf32>
    %c0_53 = arith.constant 0 : index
    %c0_54 = arith.constant 0 : index
    %c0_55 = arith.constant 0 : index
    %136 = vector.load %arg9[%c0_53, %c0_54, %c0_55] : memref<1x8x32xf32, #tpu.memory_space<vmem>>, vector<1x8x32xf32>
    %137 = vector.shape_cast %136 : vector<1x8x32xf32> to vector<8x32xf32>
    %138 = vector.shape_cast %135 : vector<8x32xf32> to vector<1x8x32xf32>
    tpu.vector_store %arg9[%c0_53, %c0_54, %c0_55], %138 {strides = array<i32>} : memref<1x8x32xf32, #tpu.memory_space<vmem>>, vector<1x8x32xf32>,
    return
  }
  func.func @transform_0(%arg0: i32) -> (i32, i32, i32) {
    %c0_i32 = arith.constant 0 : i32
    %c0_i32_0 = arith.constant 0 : i32
    %c0_i32_1 = arith.constant 0 : i32
    return %arg0, %c0_i32, %c0_i32_0 : i32, i32, i32
  }
  func.func @transform_1(%arg0: i32) -> (i32, i32, i32) {
    %c0_i32 = arith.constant 0 : i32
    %c0_i32_0 = arith.constant 0 : i32
    %c0_i32_1 = arith.constant 0 : i32
    return %arg0, %c0_i32, %c0_i32_0 : i32, i32, i32
  }
  func.func @transform_2(%arg0: i32) -> (i32, i32) {
    %c0_i32 = arith.constant 0 : i32
    %c0_i32_0 = arith.constant 0 : i32
    %c0_i32_1 = arith.constant 0 : i32
    return %c0_i32, %c0_i32_0 : i32, i32
  }
  func.func @transform_3(%arg0: i32) -> (i32, i32) {
    %c0_i32 = arith.constant 0 : i32
    %c0_i32_0 = arith.constant 0 : i32
    %c0_i32_1 = arith.constant 0 : i32
    return %c0_i32, %c0_i32_0 : i32, i32
  }
  func.func @transform_4(%arg0: i32) -> (i32, i32) {
    %c0_i32 = arith.constant 0 : i32
    %c0_i32_0 = arith.constant 0 : i32
    %c0_i32_1 = arith.constant 0 : i32
    return %c0_i32, %c0_i32_0 : i32, i32
  }
  func.func @transform_5(%arg0: i32) -> (i32, i32) {
    %c0_i32 = arith.constant 0 : i32
    %c0_i32_0 = arith.constant 0 : i32
    %c0_i32_1 = arith.constant 0 : i32
    return %c0_i32, %c0_i32_0 : i32, i32
  }
  func.func @transform_6(%arg0: i32) -> (i32, i32) {
    %c0_i32 = arith.constant 0 : i32
    %c0_i32_0 = arith.constant 0 : i32
    %c0_i32_1 = arith.constant 0 : i32
    return %c0_i32, %c0_i32_0 : i32, i32
  }
  func.func @transform_7(%arg0: i32) -> (i32, i32) {
    %c0_i32 = arith.constant 0 : i32
    %c0_i32_0 = arith.constant 0 : i32
    %c0_i32_1 = arith.constant 0 : i32
    return %c0_i32, %c0_i32_0 : i32, i32
  }
  func.func @transform_8(%arg0: i32) -> (i32, i32, i32) {
    %c0_i32 = arith.constant 0 : i32
    %c0_i32_0 = arith.constant 0 : i32
    %c0_i32_1 = arith.constant 0 : i32
    return %arg0, %c0_i32, %c0_i32_0 : i32, i32, i32
  }
}

</mosaic_0001>

<bundles_post_ra>
// kernel: tpu_custom_call.1
= control target key start
LH: loop header
LB: loop body
LE: loop exit
PB: predicated region body
PF: predicated region fallthrough
CT: control target
= control target key end

     0   :  { %13 = vsyncpa [#allocation4], 0  ;;  %s1696_s0 = inlined_call_operand.vmem [shape: f32[2,8,32], index: 0, kind: input, shape index: {}]   ;;  %s1697_s1 = inlined_call_operand.vmem [shape: f32[2,8,8], index: 1, kind: input, shape index: {}]   ;;  %s1698_s2 = inlined_call_operand.vmem [shape: bf16[96,32], index: 2, kind: input, shape index: {}]   ;;  %s1699_s3 = inlined_call_operand.vmem [shape: f32[1,96], index: 3, kind: input, shape index: {}]   ;;  %s1700_s4 = inlined_call_operand.vmem [shape: bf16[32,32], index: 4, kind: input, shape index: {}]   ;;  %s1701_s5 = inlined_call_operand.vmem [shape: f32[1,32], index: 5, kind: input, shape index: {}]   ;;  %s1702_s6 = inlined_call_operand.vmem [shape: f32[1,32], index: 6, kind: input, shape index: {}]   ;;  %s1703_s7 = inlined_call_operand.vmem [shape: f32[1,32], index: 7, kind: input, shape index: {}]   ;;  %s1704_s8 = inlined_call_operand.hbm [shape: f32[2,8,32], index: 8, kind: output, shape index: {}]  }
   0x1   :  { %15 = vsyncpa [#allocation4 + $0x1], 0  ;;  %s1447_s27 = smov 0   ;;  %s1449_s28 = smov 0  }
   0x2   :  { %s1451_s29 = smov 0   ;;  %s1453_s30 = smov 0  }
   0x3 LB: > { %s1468_s9 = sadd.s32 4294967295, %s1383_s30   ;;  %s1103_s10 = sadd.s32 4294967294, %s1383_s30   ;;  %s1383_s30 = sphi %s1453_s30, %s1710_s30   ;;  %s1379_s29 = sphi %s1451_s29, %s1709_s29   ;;  %s1375_s28 = sphi %s1449_s28, %s1708_s28   ;;  %s1371_s27 = sphi %s1447_s27, %s1707_s27  }
   0x4   : > { %s1472_s11 = sadd.s32 1, %s1383_s30   ;;  %s206_s12 = sadd.s32 1, %s1379_s29 }
   0x5   : > { %s203_s13 = ssub.s32 %s1383_s30, %s1472_s11  ;;  %p216_p0 = scmp.ne.s32.totalorder %s1379_s29, %s1375_s28 }
   0x6   : > { %p204_p1 = scmp.eq.s32.totalorder %s203_s13, 0  ;;  %p217_p2 = scmp.eq.s32.totalorder %s1468_s9, 1 }
   0x7   : > { %p222_p3 = scmp.ne.s32.totalorder %s1375_s28, %s1371_s27  ;;  %p223_p4 = scmp.eq.s32.totalorder %s1103_s10, 1 }
   0x8   : > { %s1483_s14 = scalar_select %p204_p1, %s1379_s29, %s206_s12  }
   0x9   : > { %p1485_p5 = por %p217_p2, %p216_p0  ;;  %p1489_p6 = por %p223_p4, %p222_p3 }
   0xa   : > { %p1106_p7 = scmp.ge.s32.totalorder %s1383_s30, 1  ;;  %p273_p8 = scmp.lt.s32.totalorder %s1383_s30, 3 }
   0xc   : > { %p274_p9 = pnand %p1106_p7, %p273_p8 }
   0xd   : > { %v1295_v0 = vld [vmem:[%s1698_s2] sm:$0xff] (!%p274_p9)   ;;  %v1385_v1 = vmov (!%p274_p9), 0.0   ;;  %vm370_vm0 = vcmask (!%p274_p9), 261120   ;;  %v1296_v3 = vld [vmem:[%s1698_s2 + $0x8] sm:$0xff] (!%p274_p9)   ;;  %vm1386_vm1 = vmmov (!%p274_p9), 0   ;;  %v1297_v5 = vld [vmem:[%s1698_s2 + $0x10] sm:$0xff] (!%p274_p9)  }
   0xe   : > { %277 = sbr.rel (%p274_p9) target bundleno = 3433 (0xd69), region = 52  ;;  %1168 = vmatprep.subr.bf16.mxu0 (!%p274_p9), %v1385_v1  ;;  %1184 = vmatprep.subr.bf16.mxu1 (!%p274_p9), %v1385_v1  ;;  %v375_v2 = vsel (!%p274_p9), %vm370_vm0, %v1295_v0, 0  ;;  %v378_v4 = vsel (!%p274_p9), %vm370_vm0, %v1296_v3, 0  ;;  %v381_v6 = vsel (!%p274_p9), %vm370_vm0, %v1297_v5, 0  ;;  %v1298_v7 = vld [vmem:[%s1698_s2 + $0x18] sm:$0xff] (!%p274_p9)   ;;  %v1299_v9 = vld [vmem:[%s1698_s2 + $0x20] sm:$0xff] (!%p274_p9)  }
   0xf   : > { %1169 = vmatpush3.bf16.xpose.msra.mxu0 (!%p274_p9), %v375_v2  ;;  %1180 = vmatprep.mubr.msk.bf16.mxu0 (!%p274_p9), %vm1386_vm1, %v1385_v1  ;;  %v384_v8 = vsel (!%p274_p9), %vm370_vm0, %v1298_v7, 0  ;;  %p310_p10 = scmp.lt.s32.totalorder (!%p274_p9), %s1468_s9, 1  ;;  %v387_v10 = vsel (!%p274_p9), %vm370_vm0, %v1299_v9, 0  ;;  %v1300_v11 = vld [vmem:[%s1698_s2 + $0x28] sm:$0xff] (!%p274_p9)   ;;  %v1110_v15 = vld [vmem:[%s1699_s3] ss:$0 sm:$0xff] (!%p274_p9) }
  0x10   : > { %1170 = vmatprep.subr.bf16.mxu0 (!%p274_p9), %v1385_v1  ;;  %1186 = vmatprep.mubr.msk.bf16.mxu1 (!%p274_p9), %vm1386_vm1, %v1385_v1  ;;  %v390_v12 = vsel (!%p274_p9), %vm370_vm0, %v1300_v11, 0  ;;  %s1387_s23 = smov (!%p274_p9), 64   ;;  %s1388_s24 = smov (!%p274_p9), 96   ;;  %vm439_vm2 = vcmask (!%p274_p9), 64512   ;;  %vm505_vm3 = vcmask (!%p274_p9), 1043456   ;;  %vm550_vm5 = vcmask (!%p274_p9), 60416  }
  0x11   : > { %s1390_s13 = smov (!%p274_p9), 88   ;;  %s1392_s18 = smov (!%p274_p9), 80   ;;  %vm671_vm6 = vcmask (!%p274_p9), 126016   ;;  %vm792_vm7 = vcmask (!%p274_p9), 191616   ;;  %vm913_vm8 = vcmask (!%p274_p9), 257216  }
  0x12   : > { %s1393_s19 = smov (!%p274_p9), 112   ;;  %s1395_s21 = smov (!%p274_p9), 72  }
  0x13   : > { %s1396_s22 = smov (!%p274_p9), 104   ;;  %s1399_s25 = smov (!%p274_p9), 16  }
  0x14   : > { %s1136_s26 = sshll.u32 (!%p274_p9), %s1468_s9, 7 }
  0x15   : > { %s1527_s10 = scalar_select %p310_p10, %s1468_s9, 1 }
  0x16   : > { %s1401_s9 = smov [#allocation3]  }
  0x17   : > { %1171 = vmatpush3.bf16.xpose.msra.mxu0 %v378_v4  ;;  %s1108_s17 = sshll.u32 %s1527_s10, 3  ;;  %s1389_s10 = smov 56  }
  0x18   : > { %1172 = vmatprep.subr.bf16.mxu0 %v1385_v1  ;;  %s313_s20 = scalar_lea.vmem %s1696_s0, %s1108_s17  ;;  %s317_s12 = scalar_lea.vmem %s1697_s1, %s1108_s17 }
  0x19   : > { %v1540_v13 = vld [vmem:[%s313_s20] sm:$0xff]  ;;  %s1391_s17 = smov 120   ;;  %s1394_s20 = smov 48  }
  0x1a   : > { %v320_v14 = vpack.c.bf16 %v1540_v13, %v1540_v13  ;;  %v433_v26 = vld [vmem:[%s317_s12] sm:$0xff] }
  0x1b   : > { %vm434_vm4 = vcmp.gt.f32.partialorder %v433_v26, 0.0 }
  0x1c   : > { %v1569_v28 = vsel %vm434_vm4, -inf, %v1385_v1 }
  0x1f   : > { %1173 = vmatpush3.bf16.xpose.msra.mxu0 %v381_v6 }
  0x20   : > { %1174 = vmatprep.subr.bf16.mxu0 %v1385_v1 }
  0x27   : > { %1175 = vmatpush3.bf16.xpose.msra.mxu0 %v384_v8 }
  0x28   : > { %1176 = vmatprep.subr.bf16.mxu0 %v1385_v1 }
  0x2f   : > { %1177 = vmatpush3.bf16.xpose.msra.mxu0 %v387_v10 }
  0x30   : > { %1178 = vmatprep.subr.bf16.mxu0 %v1385_v1 }
  0x37   : > { %1179 = vmatpush3.bf16.xpose.msra.mxu0 %v390_v12 }
  0x38   : > { %1232 = vmatprep.subr.bf16.mxu0 %v1385_v1 }
  0x3e   : > { %1181 = vmatmul.mubr.msk.bf16.vlgmr.msra.gmra.mrb[0].mxu0 %vm370_vm0, %v320_v14 }
  0x3f   : > { %1236 = vmatprep.mubr.msk.bf16.mxu0 %vm1386_vm1, %v1385_v1 }
 0x111   : > { %v426_v16 = vpop.f32.mrb[0].mxu0 }
 0x112   : > { %v427_v17 = vadd.f32 %v1110_v15, %v426_v16  ;;  %v1182_v18 = vpop.f32.mrb[1].mxu0 }
 0x113   : > { %v429_v19 = vpop.f32.mrb[2].mxu0 }
 0x114   : > { %v1551_v20 = vpack.c.bf16 %v427_v17, %v427_v17  ;;  %v1183_v21 = vpop.f32.mrb[3].mxu0 }
 0x116   : > { %500 = vrot.lane.b32.xlu1 %v1551_v20, %s1387_s23  ;;  %437 = vrot.lane.b32.xlu0 %v1551_v20, %s1388_s24  ;;  %s1397_s23 = smov 40   ;;  %s1398_s24 = smov 8  }
 0x188   : > { %v438_v22 = vpop.permute.xlu0 %437  ;;  %v501_v24 = vpop.permute.xlu1 %500 }
 0x189   : > { %v444_v23 = vsel %vm439_vm2, %v438_v22, 0  ;;  %v507_v25 = vsel %vm505_vm3, %v501_v24, 0 }
 0x18a   : > { %1185 = vmatpush3.bf16.xpose.msra.mxu1 %v444_v23 }
 0x18b   : > { %1190 = vmatprep.subr.bf16.mxu1 %v1385_v1 }
 0x191   : > { %1187 = vmatmul.mubr.msk.bf16.vlgmr.msra.gmra.mrb[0].mxu1 %vm439_vm2, %v1551_v20 }
 0x192   : > { %1191 = vmatpush3.bf16.msra.mxu1 %v507_v25  ;;  %1192 = vmatprep.mubr.msk.bf16.mxu1 %vm1386_vm1, %v1385_v1 }
 0x193   : > { %1196 = vmatprep.subr.bf16.mxu1 %v1385_v1 }
 0x264   : > { %v480_v27 = vpop.f32.mrb[0].mxu1 }
 0x265   : > { %v486_v29 = vmul.f32 0.35355338, %v480_v27  ;;  %v1188_v30 = vpop.f32.mrb[1].mxu1 }
 0x266   : > { %v483_v31 = vpop.f32.mrb[2].mxu1 }
 0x267   : > { %v1189_v32 = vpop.f32.mrb[3].mxu1  ;;  %v487_v33 = vadd.f32 %v486_v29, %v1569_v28 }
 0x269   : > { %v488_v34 = vsel %vm439_vm2, %v487_v33, -inf }
 0x26a   : > { %489 = vmax.xlane.f32.xlu0 %v488_v34 }
 0x280   : > { %616 = vrot.lane.b32.xlu0 %v1551_v20, %s1389_s10 }
 0x2f7   : > { %v490_v35 = vpop.xlane.xlu0 %489 }
 0x2f8   : > { %v491_v36 = vsub.f32 %v487_v33, %v490_v35 }
 0x2fa   : > { %v492_v37 = vmul.f32 1.442695, %v491_v36 }
 0x2fb   : > { %v617_v46 = vpop.permute.xlu0 %616 }
 0x2fc   : > { %1303 = vpow2.f32 %v492_v37  ;;  %v622_v48 = vsel %vm505_vm3, %v617_v46, 0 }
 0x306   : > { %v1304_v38 = vpop.eup %1303 }
 0x307   : > { %v494_v39 = vsel %vm439_vm2, %v1304_v38, 0.0 }
 0x308   : > { %495 = vadd.xlane.f32.xlu1 %v494_v39 }
 0x319   : > { %554 = vrot.lane.b32.xlu1 %v1551_v20, %s1390_s13 }
 0x31d   : > { %552 = vrot.lane.b32.xlu1 %v1551_v20, %s1391_s17  ;;  %s1400_s17 = smov 24  }
 0x395   : > { %v496_v40 = vpop.xlane.xlu1 %495 }
 0x396   : > { %1305 = vrcp.f32 %v496_v40 }
 0x399   : > { %v555_v43 = vpop.permute.xlu1 %554 }
 0x39a   : > { %v560_v45 = vsel %vm439_vm2, %v555_v43, 0 }
 0x39d   : > { %v553_v47 = vpop.permute.xlu1 %552 }
 0x3a0   : > { %v1306_v41 = vpop.eup %1305 }
 0x3a1   : > { %v498_v42 = vmul.f32 %v1306_v41, %v1304_v38 }
 0x3a3   : > { %v499_v44 = vpack.c.bf16 %v498_v42, %v498_v42 }
 0x3a5   : > { %1193 = vmatmul.mubr.msk.bf16.vlgmr.msra.gmra.mrb[4].mxu1 %vm439_vm2, %v499_v44 }
 0x3a6   : > { %1197 = vmatpush3.bf16.xpose.msra.mxu1 %v560_v45  ;;  %1198 = vmatprep.mubr.msk.bf16.mxu1 %vm1386_vm1, %v1385_v1 }
 0x3a7   : > { %1202 = vmatprep.subr.bf16.mxu1 %v1385_v1 }
 0x3ad   : > { %1199 = vmatmul.mubr.msk.bf16.vlgmr.msra.gmra.mrb[8].mxu1 %vm439_vm2, %v553_v47 }
 0x3ae   : > { %1203 = vmatpush3.bf16.msra.mxu1 %v622_v48  ;;  %1204 = vmatprep.mubr.msk.bf16.mxu1 %vm1386_vm1, %v1385_v1 }
 0x3af   : > { %1208 = vmatprep.subr.bf16.mxu1 %v1385_v1 }
 0x478   : > { %v543_v49 = vpop.f32.mrb[4].mxu1 }
 0x479   : > { %v549_v50 = vpack.c.bf16 %v543_v49, %v543_v49  ;;  %v1194_v51 = vpop.f32.mrb[5].mxu1 }
 0x47a   : > { %v546_v52 = vpop.f32.mrb[6].mxu1 }
 0x47b   : > { %551 = vst.msk [vmem:[#allocation2] sm:$0xf] %vm550_vm5, %v549_v50  ;;  %v1195_v53 = vpop.f32.mrb[7].mxu1 }
 0x480   : > { %v596_v54 = vpop.f32.mrb[8].mxu1 }
 0x481   : > { %v602_v55 = vmul.f32 0.35355338, %v596_v54  ;;  %v1200_v56 = vpop.f32.mrb[9].mxu1 }
 0x482   : > { %v599_v57 = vpop.f32.mrb[10].mxu1 }
 0x483   : > { %v1201_v58 = vpop.f32.mrb[11].mxu1  ;;  %v603_v59 = vadd.f32 %v602_v55, %v1569_v28 }
 0x485   : > { %v604_v60 = vsel %vm439_vm2, %v603_v59, -inf }
 0x486   : > { %605 = vmax.xlane.f32.xlu1 %v604_v60 }
 0x513   : > { %v606_v61 = vpop.xlane.xlu1 %605 }
 0x514   : > { %v607_v62 = vsub.f32 %v603_v59, %v606_v61 }
 0x516   : > { %v608_v63 = vmul.f32 1.442695, %v607_v62  ;;  %v1301_v62 = vld [vmem:[%s1700_s4] sm:$0xff]  }
 0x518   : > { %1307 = vpow2.f32 %v608_v63  ;;  %v941_v63 = vsel %vm370_vm0, %v1301_v62, 0 }
 0x519   : > { %1233 = vmatpush3.bf16.xpose.msra.mxu0 %v941_v63 }
 0x51a   : > { %1234 = vmatprep.subr.bf16.mxu0 %v1385_v1 }
 0x522   : > { %v1308_v0 = vpop.eup %1307 }
 0x523   : > { %v610_v2 = vsel %vm439_vm2, %v1308_v0, 0.0 }
 0x524   : > { %611 = vadd.xlane.f32.xlu0 %v610_v2 }
 0x53a   : > { %675 = vrot.lane.b32.xlu0 %v1551_v20, %s1392_s18  ;;  %s1653_s18 = scalar_lea.hbm %s1704_s8, %s1136_s26 }
 0x53e   : > { %673 = vrot.lane.b32.xlu0 %v1551_v20, %s1393_s19 }
 0x5b1   : > { %v612_v3 = vpop.xlane.xlu0 %611 }
 0x5b2   : > { %1309 = vrcp.f32 %v612_v3 }
 0x5b5   : > { %v676_v6 = vpop.permute.xlu0 %675 }
 0x5b6   : > { %v681_v8 = vsel %vm439_vm2, %v676_v6, 0 }
 0x5b9   : > { %v674_v9 = vpop.permute.xlu0 %673 }
 0x5bc   : > { %v1310_v4 = vpop.eup %1309 }
 0x5bd   : > { %v614_v5 = vmul.f32 %v1310_v4, %v1308_v0  ;;  %v1302_v0 = vld [vmem:[%s1700_s4 + $0x8] sm:$0xff]  }
 0x5be   : > { %v944_v2 = vsel %vm370_vm0, %v1302_v0, 0 }
 0x5bf   : > { %v615_v7 = vpack.c.bf16 %v614_v5, %v614_v5  ;;  %1235 = vmatpush3.bf16.xpose.msra.mxu0 %v944_v2 }
 0x5c1   : > { %1205 = vmatmul.mubr.msk.bf16.vlgmr.msra.gmra.mrb[12].mxu1 %vm439_vm2, %v615_v7 }
 0x5c2   : > { %1209 = vmatpush3.bf16.xpose.msra.mxu1 %v681_v8  ;;  %1210 = vmatprep.mubr.msk.bf16.mxu1 %vm1386_vm1, %v1385_v1 }
 0x5c3   : > { %1214 = vmatprep.subr.bf16.mxu1 %v1385_v1 }
 0x5c9   : > { %1211 = vmatmul.mubr.msk.bf16.vlgmr.msra.gmra.mrb[16].mxu1 %vm439_vm2, %v674_v9 }
 0x5ca   : > { %1216 = vmatprep.mubr.msk.bf16.mxu1 %vm1386_vm1, %v1385_v1 }
 0x694   : > { %v1600_v10 = vpop.f32.mrb[12].mxu1 }
 0x695   : > { %v1206_v11 = vpop.f32.mrb[13].mxu1  ;;  %v1139_v54 = vpack.c.bf16 %v1600_v10, %v1600_v10 }
 0x696   : > { %v661_v12 = vpop.f32.mrb[14].mxu1 }
 0x697   : > { %v1207_v14 = vpop.f32.mrb[15].mxu1 }
 0x69c   : > { %v717_v15 = vpop.f32.mrb[16].mxu1 }
 0x69d   : > { %v723_v16 = vmul.f32 0.35355338, %v717_v15  ;;  %v1212_v17 = vpop.f32.mrb[17].mxu1 }
 0x69e   : > { %v720_v18 = vpop.f32.mrb[18].mxu1 }
 0x69f   : > { %v1213_v19 = vpop.f32.mrb[19].mxu1  ;;  %v724_v21 = vadd.f32 %v723_v16, %v1569_v28 }
 0x6a1   : > { %v725_v22 = vsel %vm439_vm2, %v724_v21, -inf }
 0x6a2   : > { %726 = vmax.xlane.f32.xlu1 %v725_v22 }
 0x6b3   : > { %737 = vrot.lane.b32.xlu1 %v1551_v20, %s1394_s20  ;;  %s307_s20 = sand.u32 1, %s1375_s28  }
 0x6b4   : > { %s1019_s19 = scalar_lea.sflag [#allocation4], %s307_s20 }
 0x6b7   : > { %796 = vrot.lane.b32.xlu1 %v1551_v20, %s1395_s21  ;;  %s1107_s21 = sshll.u32 %s307_s20, 3 }
 0x6b8   : > { %s309_s12 = scalar_lea.vmem [#allocation3], %s1107_s21  ;;  %s1325_s21 = sshll.u32 %s1401_s9, 4  ;;  %s1326_s21 = int_to_ptr.vmem [resolvable:$false] %s1325_s21 }
 0x6b9   : > { %s1032_s10 = sshll.u32 %s309_s12, 4  ;;  %s1655_s10 = int_to_ptr.vmem [resolvable:$true] %s1032_s10 }
 0x6ba   : > { %p1328_p0 = scmp.lt.s32.totalorder %s1655_s10, %s1326_s21 }
 0x6bb   : > { %794 = vrot.lane.b32.xlu1 %v1551_v20, %s1396_s22  ;;  %s1321_s22 = scalar_lea.vmem %s1655_s10, 128 }
 0x6bc   : > { %p1322_p11 = scmp.ne.s32.totalorder %s1655_s10, %s1321_s22 }
 0x6be   : > { %p1323_p12 = pnand %p1322_p11, %p1485_p5 }
 0x6c0   : > { %p1324_p13 = pneg %p1323_p12 }
 0x72f   : > { %v727_v23 = vpop.xlane.xlu1 %726 }
 0x730   : > { %v728_v24 = vsub.f32 %v724_v21, %v727_v23 }
 0x732   : > { %v729_v25 = vmul.f32 1.442695, %v728_v24 }
 0x733   : > { %v738_v26 = vpop.permute.xlu1 %737 }
 0x734   : > { %1311 = vpow2.f32 %v729_v25  ;;  %v743_v27 = vsel %vm505_vm3, %v738_v26, 0 }
 0x735   : > { %1215 = vmatpush3.bf16.msra.mxu1 %v743_v27 }
 0x736   : > { %1220 = vmatprep.subr.bf16.mxu1 %v1385_v1 }
 0x737   : > { %v797_v34 = vpop.permute.xlu1 %796 }
 0x738   : > { %v802_v36 = vsel %vm439_vm2, %v797_v34, 0 }
 0x73b   : > { %v795_v37 = vpop.permute.xlu1 %794 }
 0x73e   : > { %v1312_v29 = vpop.eup %1311 }
 0x73f   : > { %v731_v30 = vsel %vm439_vm2, %v1312_v29, 0.0 }
 0x740   : > { %732 = vadd.xlane.f32.xlu0 %v731_v30  ;;  %v1134_v30 = vld [vmem:[%s1703_s7] ss:$0 sm:$0xff] }
 0x7cd   : > { %v733_v31 = vpop.xlane.xlu0 %732 }
 0x7ce   : > { %1313 = vrcp.f32 %v733_v31 }
 0x7d8   : > { %v1314_v32 = vpop.eup %1313 }
 0x7d9   : > { %v735_v33 = vmul.f32 %v1314_v32, %v1312_v29 }
 0x7db   : > { %v736_v35 = vpack.c.bf16 %v735_v33, %v735_v33 }
 0x7dd   : > { %1217 = vmatmul.mubr.msk.bf16.vlgmr.msra.gmra.mrb[20].mxu1 %vm439_vm2, %v736_v35 }
 0x7de   : > { %1221 = vmatpush3.bf16.xpose.msra.mxu1 %v802_v36  ;;  %1222 = vmatprep.mubr.msk.bf16.mxu1 %vm1386_vm1, %v1385_v1 }
 0x7df   : > { %1226 = vmatprep.subr.bf16.mxu1 %v1385_v1 }
 0x7e5   : > { %1223 = vmatmul.mubr.msk.bf16.vlgmr.msra.gmra.mrb[24].mxu1 %vm439_vm2, %v795_v37 }
 0x7e6   : > { %1228 = vmatprep.mubr.msk.bf16.mxu1 %vm1386_vm1, %v1385_v1  ;;  %v1129_v1 = vld [vmem:[%s1701_s5] ss:$0 sm:$0xff] }
 0x8b0   : > { %v779_v38 = vpop.f32.mrb[20].mxu1 }
 0x8b1   : > { %v1218_v39 = vpop.f32.mrb[21].mxu1 }
 0x8b2   : > { %v782_v40 = vpop.f32.mrb[22].mxu1 }
 0x8b3   : > { %v1219_v41 = vpop.f32.mrb[23].mxu1 }
 0x8b8   : > { %v838_v42 = vpop.f32.mrb[24].mxu1 }
 0x8b9   : > { %v844_v43 = vmul.f32 0.35355338, %v838_v42  ;;  %v1224_v44 = vpop.f32.mrb[25].mxu1 }
 0x8ba   : > { %v841_v45 = vpop.f32.mrb[26].mxu1 }
 0x8bb   : > { %v1225_v46 = vpop.f32.mrb[27].mxu1  ;;  %v845_v47 = vadd.f32 %v844_v43, %v1569_v28  ;;  %v1140_v28 = vpack.c.bf16 %v779_v38, %v779_v38 }
 0x8bd   : > { %v846_v48 = vsel %vm439_vm2, %v845_v47, -inf }
 0x8be   : > { %847 = vmax.xlane.f32.xlu1 %v846_v48 }
 0x94b   : > { %v848_v49 = vpop.xlane.xlu1 %847 }
 0x94c   : > { %v849_v50 = vsub.f32 %v845_v47, %v848_v49 }
 0x94e   : > { %v850_v51 = vmul.f32 1.442695, %v849_v50 }
 0x950   : > { %1315 = vpow2.f32 %v850_v51 }
 0x95a   : > { %v1316_v52 = vpop.eup %1315 }
 0x95b   : > { %v852_v53 = vsel %vm439_vm2, %v1316_v52, 0.0 }
 0x95c   : > { %853 = vadd.xlane.f32.xlu0 %v852_v53 }
 0x972   : > { %858 = vrot.lane.b32.xlu0 %v1551_v20, %s1397_s23  ;;  %s1327_s23 = scalar_lea.vmem %s1326_s21, 256 }
 0x973   : > { %p1329_p1 = scmp.lt.s32.totalorder %s1327_s23, %s1321_s22 }
 0x975   : > { %p1330_p2 = por %p1329_p1, %p1328_p0 }
 0x976   : > { %668 = vrot.lane.b32.xlu0 %v1139_v54, %s1398_s24 }
 0x977   : > { %p1331_p3 = pnand %p1330_p2, %p1324_p13 }
 0x97a   : > { %789 = vrot.lane.b32.xlu0 %v1140_v28, %s1399_s25 }
 0x9e9   : > { %v854_v55 = vpop.xlane.xlu0 %853 }
 0x9ea   : > { %1317 = vrcp.f32 %v854_v55 }
 0x9ed   : > { %v859_v56 = vpop.permute.xlu0 %858 }
 0x9ee   : > { %v864_v57 = vsel %vm505_vm3, %v859_v56, 0 }
 0x9ef   : > { %1227 = vmatpush3.bf16.msra.mxu1 %v864_v57 }
 0x9f1   : > { %v669_v58 = vpop.permute.xlu0 %668 }
 0x9f2   : > { %672 = vst.msk [vmem:[#allocation2] sm:$0xf] %vm671_vm6, %v669_v58 }
 0x9f4   : > { %v1318_v59 = vpop.eup %1317 }
 0x9f5   : > { %v856_v20 = vmul.f32 %v1318_v59, %v1316_v52  ;;  %v790_v60 = vpop.permute.xlu0 %789 }
 0x9f6   : > { %793 = vst.msk [vmem:[#allocation2] sm:$0xf] %vm792_vm7, %v790_v60 }
 0x9f7   : > { %v857_v61 = vpack.c.bf16 %v856_v20, %v856_v20 }
 0x9f9   : > { %1229 = vmatmul.mubr.msk.bf16.vlgmr.msra.gmra.mrb[28].mxu1 %vm439_vm2, %v857_v61 }
 0xacc   : > { %v900_v3 = vpop.f32.mrb[28].mxu1 }
 0xacd   : > { %v1141_v4 = vpack.c.bf16 %v900_v3, %v900_v3  ;;  %v1230_v5 = vpop.f32.mrb[29].mxu1 }
 0xace   : > { %v903_v6 = vpop.f32.mrb[30].mxu1 }
 0xacf   : > { %910 = vrot.lane.b32.xlu1 %v1141_v4, %s1400_s17  ;;  %v1231_v7 = vpop.f32.mrb[31].mxu1 }
 0xb41   : > { %v911_v8 = vpop.permute.xlu1 %910 }
 0xb42   : > { %914 = vst.msk [vmem:[#allocation2] sm:$0xf] %vm913_vm8, %v911_v8 }
 0xb49   : > { %v915_v9 = vld [vmem:[#allocation2] sm:$0xf] }
 0xb4a   : > { %1237 = vmatmul.mubr.msk.bf16.vlgmr.msra.gmra.mrb[4].mxu0 %vm370_vm0, %v915_v9 }
 0xc1d   : > { %v980_v10 = vpop.f32.mrb[4].mxu0 }
 0xc1e   : > { %v981_v11 = vadd.f32 %v1129_v1, %v980_v10  ;;  %v1238_v12 = vpop.f32.mrb[5].mxu0 }
 0xc1f   : > { %v983_v14 = vpop.f32.mrb[6].mxu0 }
 0xc20   : > { %v1239_v15 = vpop.f32.mrb[7].mxu0  ;;  %v986_v16 = vadd.f32 %v981_v11, %v1540_v13  ;;  %v1133_v13 = vld [vmem:[%s1702_s6] ss:$0 sm:$0xff] }
 0xc22   : > { %v987_v17 = vsel %vm370_vm0, %v986_v16, 0.0 }
 0xc23   : > { %988 = vadd.xlane.f32.xlu0 %v987_v17 }
 0xcb0   : > { %v989_v18 = vpop.xlane.xlu0 %988 }
 0xcb1   : > { %v991_v19 = vmul.f32 0.03125, %v989_v18 }
 0xcb3   : > { %v992_v21 = vsub.f32 %v986_v16, %v991_v19 }
 0xcb5   : > { %v993_v22 = vmul.f32 %v992_v21, %v992_v21 }
 0xcb7   : > { %v994_v23 = vsel %vm370_vm0, %v993_v22, 0.0 }
 0xcb8   : > { %995 = vadd.xlane.f32.xlu1 %v994_v23 }
 0xd45   : > { %v996_v24 = vpop.xlane.xlu1 %995 }
 0xd46   : > { %v997_v25 = vmul.f32 0.03125, %v996_v24 }
 0xd48   : > { %v998_v26 = vadd.f32 1e-05, %v997_v25 }
 0xd4a   : > { %1319 = vrsqrt.f32 %v998_v26 }
 0xd54   : > { %v1320_v27 = vpop.eup %1319 }
 0xd55   : > { %v1000_v29 = vmul.f32 %v1320_v27, %v992_v21 }
 0xd57   : > { %v1008_v31 = vmul.f32 %v1133_v13, %v1000_v29 }
 0xd59   : > { %v1016_v32 = vadd.f32 %v1134_v30, %v1008_v31 }
 0xd5b   : > { %1017 = vst.msk [vmem:[%s309_s12] sm:$0xff] %vm370_vm0, %v1016_v32 }
 0xd5c   : > { %1334 = shalt.err (!%p1331_p3)
}
 0xd5d   : > { %s1335_s20 = scalar_lea.hbm %s1653_s18, 128  ;;  %s1339_s26 = scalar_lea.hbm %s1704_s8, 256 }
 0xd5e   : > { %p1336_p4 = scmp.ne.s32.totalorder %s1653_s18, %s1335_s20  ;;  %p1340_p9 = scmp.lt.u32.totalorder %s1653_s18, %s1704_s8 }
 0xd5f   : > { %p1341_p10 = scmp.lt.u32.totalorder %s1339_s26, %s1335_s20  ;;  %p1343_p12 = scmp.lt.u32.totalorder %s1335_s20, %s1653_s18 }
 0xd60   : > { %p1337_p7 = pnand %p1336_p4, %p1485_p5 }
 0xd61   : > { %p1342_p11 = por %p1341_p10, %p1340_p9 }
 0xd62   : > { %p1338_p8 = pneg %p1337_p7 }
 0xd63   : > { %p1344_p13 = por %p1343_p12, %p1342_p11 }
 0xd65   : > { %p1345_p0 = pnand %p1344_p13, %p1338_p8 }
 0xd67   : > { %1348 = shalt.err (!%p1345_p0)
}
 0xd68   : > { %1240 = dma.vmem_to_hbm [thread:$0]  (%p1485_p5), %s1655_s10, 128, %s1653_s18, %s1019_s19  }
 0xd69 PF: > { %p1246_p1 = scmp.ge.s32.totalorder %s1383_s30, 2  ;;  %s1044_s17 = sand.u32 1, %s1371_s27  }
 0xd6a   : > { %s1045_s22 = scalar_lea.sflag [#allocation4], %s1044_s17 }
 0xd6b   : > { %p1243_p2 = pnand %p1246_p1, %p1489_p6 }
 0xd6d   : > { %1366 = dma.done.wait (!%p1243_p2), %s1045_s22, 128  }
 0xd6e   : > { %1368 = vsyncadd (!%p1243_p2), %s1045_s22, 4294967168  ;;  %p18_p3 = scmp.ge.s32.totalorder %s1472_s11, 4   ;;  %s1707_s27 = smov %s1375_s28 }
 0xd6f   : > { %s1708_s28 = smov %s1379_s29  ;;  %s1709_s29 = smov %s1483_s14 }
 0xd70   : > { %s1710_s30 = smov %s1472_s11  ;;  %20 = sbr.rel (!%p18_p3) target bundleno = 3 (0x3), region = 90 }
 0xd77   :  { %1050 = vsyncpa [#allocation4], 1 }
 0xd78   :  { %1052 = vsyncpa [#allocation4 + $0x1], 1 }

</bundles_post_ra>
